<compile_context>
chip_gen: v7x
topology: tpu7x:2x2x1
jax: 0.10.0
libtpu: 0.0.40
codegen_flags: <defaults>
</compile_context>

<pallas_src>
import math

import numpy as np
import jax
import jax.numpy as jnp
from jax.experimental import pallas as pl
from jax.experimental.pallas import tpu as pltpu


def _round_up(x, m):
    return (x + m - 1) // m * m


def _encoder_fused_kernel(x_ref, m_ref, w_ref, b_ref, o_ref):
    """All encoder layers for one tile of batch elements.

    x_ref : (Bt, Lp, C)     f32   channel/length padded activations (channels-last)
    m_ref : (Bt, Lp, 1)     f32   sequence mask {0., 1.} (0 on padded rows)
    w_ref : (NL, K, C, C)   bf16  per-layer conv weights, tap-major, branch-packed
    b_ref : (NL, 1, C)      f32   per-layer biases (branch-packed, 0 on padded channels)
    o_ref : (Bt, Lp, C)     f32   last-layer output
    """
    Bt, Lp, C = x_ref.shape
    NL, K = w_ref.shape[0], w_ref.shape[1]
    M = Bt * Lp
    pad = (K - 1) // 2

    # Local position inside each sequence (sequences are Lp-row blocks of the tile).
    local = jax.lax.broadcasted_iota(jnp.int32, (M, 1), 0) % Lp

    # Per-tap validity masks (zero contributions that would cross a sequence /
    # batch boundary).  Depend only on the tap, so hoisted out of the layer loop.
    valid = []
    for k in range(K):
        s = pad - k
        if s == 0:
            valid.append(None)
        else:
            valid.append((local >= max(s, 0)) & (local < Lp + min(s, 0)))

    mask_seq = m_ref[...].reshape(M, 1)          # f32 {0,1}
    x_cur = x_ref[...].reshape(M, C)             # f32, stays resident across layers

    for li in range(NL):                         # static: enc_layers is small
        # masked_fill_(~mask, 0.)  ==  x * mask ; bf16 operands for the MXU
        xm = (x_cur * mask_seq).astype(jnp.bfloat16)

        acc = None
        for k in range(K):                       # static taps
            y = jnp.dot(xm, w_ref[li, k], preferred_element_type=jnp.float32)
            s = pad - k
            if s != 0:
                # shift the un-shifted matmul result on the (idle) XLU slot
                y = pltpu.roll(y, shift=s % M, axis=0)
                y = jnp.where(valid[k], y, 0.0)
            acc = y if acc is None else acc + y
        acc = acc + b_ref[li]                    # (1, C) broadcast, f32

        # Exact tanh-GeLU from the module, kept strictly in f32
        # (v5e VPU/EUP have no bf16 path).
        x_cur = 0.5 * acc * (1.0 + jnp.tanh(acc * 0.7978845608 *
                                            (1.0 + 0.044715 * acc * acc)))

    o_ref[...] = x_cur.reshape(Bt, Lp, C).astype(o_ref.dtype)


def _choose_bt(B, Lp, max_rows=2048):
    """Largest divisor of B whose folded tile Bt*Lp stays within max_rows."""
    best = 1
    for bt in range(1, B + 1):
        if B % bt == 0 and bt * Lp <= max_rows:
            best = bt
    return best


def init_encoder_params(key, input_size, hidden_size, kernel_sizes, enc_layers):
    """Parameters mirroring the PyTorch module, packed for the fused kernel.

    nn.init.normal_(conv.weight, std=sqrt(2/(in_channels*k))); zero bias.
    weight_norm(conv) is an identity reparameterization at init (g = ||v||), so
    the effective weight equals v.
    # TODO(synk): if loading *trained* PyTorch weights, materialize g * v/||v||
    # before packing.
    """
    assert all(k % 2 == 1 for k in kernel_sizes), "only odd kernel sizes"
    assert hidden_size % len(kernel_sizes) == 0
    out_per = hidden_size // len(kernel_sizes)
    K_max = max(kernel_sizes)
    C = _round_up(max(input_size, hidden_size), 128)   # lane-dense channel padding

    w_layers, b_layers, raw = [], [], []
    for i in range(enc_layers):
        c_in = input_size if i == 0 else hidden_size
        w_full = np.zeros((K_max, C, C), np.float32)
        b_full = np.zeros((1, C), np.float32)
        raw_layer = []
        for bi, ks in enumerate(kernel_sizes):
            key, wk = jax.random.split(key)
            std = math.sqrt(2.0 / (c_in * ks))
            # PyTorch conv1d layout (C_out, C_in, K)
            w_t = std * jax.random.normal(wk, (out_per, c_in, ks), dtype=jnp.float32)
            b_t = jnp.zeros((out_per,), jnp.float32)
            raw_layer.append((w_t, b_t))
            # Branch outputs occupy disjoint channel slots -> summing the packed
            # per-branch convs == channel-dim concatenation of the branches.
            off_k = (K_max - ks) // 2            # center smaller kernels in K_max taps
            off_o = bi * out_per
            w_full[off_k:off_k + ks, :c_in, off_o:off_o + out_per] = \
                np.transpose(np.asarray(w_t), (2, 1, 0))
            b_full[0, off_o:off_o + out_per] = np.asarray(b_t)
        w_layers.append(w_full)
        b_layers.append(b_full)
        raw.append(raw_layer)

    return {
        "w": jnp.asarray(np.stack(w_layers)).astype(jnp.bfloat16),  # (NL, K, C, C)
        "b": jnp.asarray(np.stack(b_layers)),                       # (NL, 1, C) f32
        "in_size": input_size,
        "hidden": hidden_size,
        "raw": raw,                                                 # for reference check
    }


def encoder_forward(x, mask, params):
    """Encoder.forward in eval mode.

    x:    (B, L, input_size) float32
    mask: (B, L, 1) bool
    returns (B, L, hidden_size) float32
    """
    B, L, _ = x.shape
    w_all, b_all = params["w"], params["b"]
    in_size, hidden = params["in_size"], params["hidden"]
    NL, K, C, _ = w_all.shape

    # Pad L to a sublane multiple.  Padded rows carry mask=0, so the per-layer
    # masked_fill re-zeroes them and they reproduce the conv's zero padding exactly.
    Lp = _round_up(L, 8)
    xp = jnp.zeros((B, Lp, C), x.dtype).at[:, :L, :in_size].set(x)
    mp = jnp.zeros((B, Lp, 1), x.dtype).at[:, :L, :].set(mask.astype(x.dtype))

    Bt = _choose_bt(B, Lp)              # fold batch elements so the MXU sees Bt*Lp rows
    grid = (B // Bt,)

    cost = pl.CostEstimate(
        flops=2 * B * Lp * NL * K * C * C,
        transcendentals=B * Lp * NL * C,
        bytes_accessed=int((xp.size + mp.size) * 4 + w_all.size * 2 +
                           b_all.size * 4 + B * Lp * C * 4),
    )

    out = pl.pallas_call(
        _encoder_fused_kernel,
        out_shape=jax.ShapeDtypeStruct((B, Lp, C), x.dtype),
        grid=grid,
        in_specs=[
            pl.BlockSpec((Bt, Lp, C), lambda i: (i, 0, 0)),
            pl.BlockSpec((Bt, Lp, 1), lambda i: (i, 0, 0)),
            pl.BlockSpec((NL, K, C, C), lambda i: (0, 0, 0, 0)),   # resident weights
            pl.BlockSpec((NL, 1, C), lambda i: (0, 0, 0)),          # resident biases
        ],
        out_specs=pl.BlockSpec((Bt, Lp, C), lambda i: (i, 0, 0)),
        compiler_params=pltpu.CompilerParams(
            dimension_semantics=("parallel",)),   # batch tiles are independent
        cost_estimate=cost,
    )(xp, mp, w_all, b_all)

    return out[:, :L, :hidden]


def _ref_forward(x, mask, raw_params):
    """Independent pure-JAX reference (channels-last) of the PyTorch forward."""
    m = mask.astype(x.dtype)
    B, L, _ = x.shape
    for layer in raw_params:
        x = x * m
        outs = []
        for (w, b) in layer:                      # w: (C_out, C_in, K)
            C_out, _, K = w.shape
            pad = (K - 1) // 2
            xpad = jnp.pad(x, ((0, 0), (pad, pad), (0, 0)))
            y = jnp.broadcast_to(b, (B, L, C_out))
            for k in range(K):
                y = y + jnp.einsum('blc,oc->blo', xpad[:, k:k + L, :], w[:, :, k])
            y = 0.5 * y * (1.0 + jnp.tanh(y * 0.7978845608 * (1.0 + 0.044715 * y * y)))
            outs.append(y)
        # Channel-dim concat (identical to the module for kernel_sizes=(3,)).
        x = jnp.concatenate(outs, axis=-1)
    return x


if __name__ == "__main__":
    B, L = 4, 16
    input_size, hidden_size = 50, 64
    kernel_sizes = (3,)
    enc_layers = 2

    key = jax.random.PRNGKey(0)
    kx, kp = jax.random.split(key)

    x = jax.random.normal(kx, (B, L, input_size), dtype=jnp.float32)
    lengths = jnp.array([L, 11, L, 7], dtype=jnp.int32)
    pos = jnp.arange(L)[None, :]
    mask = (pos < lengths[:, None])[:, :, None]        # (B, L, 1) bool padding mask

    params = init_encoder_params(kp, input_size, hidden_size, kernel_sizes, enc_layers)

    out = encoder_forward(x, mask, params)
    jax.block_until_ready(out)
    assert out.shape == (B, L, hidden_size)

    ref = _ref_forward(x, mask, params["raw"])
    err = float(jnp.max(jnp.abs(out - ref)))
    assert err < 5e-2, f"max abs error vs reference: {err}"

    print("KERNEL_OK")
</pallas_src>

<mosaic_0001>
module attributes {stable_mosaic.version = 11 : i64} {
  func.func @_encoder_fused_kernel(%arg0: i32, %arg1: memref<4x16x128xf32, #tpu.memory_space<vmem>>, %arg2: memref<4x16x1xf32, #tpu.memory_space<vmem>>, %arg3: memref<2x3x128x128xbf16, #tpu.memory_space<vmem>>, %arg4: memref<2x1x128xf32, #tpu.memory_space<vmem>>, %arg5: memref<4x16x128xf32, #tpu.memory_space<vmem>>) attributes {dimension_semantics = [#tpu.dimension_semantics<parallel>], iteration_bounds = array<i64: 1>, scalar_prefetch = 0 : i64, scratch_operands = 0 : i64, tpu.core_type = #tpu.core_type<tc>, window_params = [{transform_indices = @transform_0, window_bounds = array<i64: 4, 16, 128>}, {transform_indices = @transform_1, window_bounds = array<i64: 4, 16, 1>}, {pipeline_mode = #tpu.pipeline_mode<synchronous>, transform_indices = @transform_2, window_bounds = array<i64: 2, 3, 128, 128>}, {pipeline_mode = #tpu.pipeline_mode<synchronous>, transform_indices = @transform_3, window_bounds = array<i64: 2, 1, 128>}, {transform_indices = @transform_4, window_bounds = array<i64: 4, 16, 128>}]} {
    %0 = tpu.iota {dimensions = array<i32: 0>} : vector<64x1xi32>
    %c16_i32 = arith.constant 16 : i32
    %c0_i32 = arith.constant 0 : i32
    %1 = arith.cmpi eq, %c16_i32, %c0_i32 : i32
    %c1_i32 = arith.constant 1 : i32
    %2 = arith.select %1, %c1_i32, %c16_i32 : i32
    %3 = vector.broadcast %2 : i32 to vector<64x1xi32>
    %4 = arith.remsi %0, %3 : vector<64x1xi32>
    %c0_i32_0 = arith.constant 0 : i32
    %5 = vector.broadcast %c0_i32_0 : i32 to vector<64x1xi32>
    %6 = arith.cmpi ne, %4, %5 : vector<64x1xi32>
    %c0_i32_1 = arith.constant 0 : i32
    %7 = vector.broadcast %c0_i32_1 : i32 to vector<64x1xi32>
    %8 = arith.cmpi slt, %4, %7 : vector<64x1xi32>
    %c0_i32_2 = arith.constant 0 : i32
    %9 = arith.cmpi slt, %2, %c0_i32_2 : i32
    %10 = vector.broadcast %9 : i1 to vector<64x1xi1>
    %11 = vector.broadcast %10 : vector<64x1xi1> to vector<64x1xi1>
    %12 = arith.xori %8, %11 : vector<64x1xi1>
    %13 = arith.andi %12, %6 : vector<64x1xi1>
    %14 = vector.broadcast %2 : i32 to vector<64x1xi32>
    %15 = arith.addi %4, %14 : vector<64x1xi32>
    %16 = arith.select %13, %15, %4 : vector<64x1xi1>, vector<64x1xi32>
    %c1_i32_3 = arith.constant 1 : i32
    %17 = vector.broadcast %c1_i32_3 : i32 to vector<64x1xi32>
    %18 = arith.cmpi sge, %16, %17 : vector<64x1xi32>
    %c16_i32_4 = arith.constant 16 : i32
    %19 = vector.broadcast %c16_i32_4 : i32 to vector<64x1xi32>
    %20 = arith.cmpi slt, %16, %19 : vector<64x1xi32>
    %21 = arith.andi %18, %20 : vector<64x1xi1>
    %c0_i32_5 = arith.constant 0 : i32
    %22 = vector.broadcast %c0_i32_5 : i32 to vector<64x1xi32>
    %23 = arith.cmpi sge, %16, %22 : vector<64x1xi32>
    %c15_i32 = arith.constant 15 : i32
    %24 = vector.broadcast %c15_i32 : i32 to vector<64x1xi32>
    %25 = arith.cmpi slt, %16, %24 : vector<64x1xi32>
    %26 = arith.andi %23, %25 : vector<64x1xi1>
    %c0 = arith.constant 0 : index
    %c0_6 = arith.constant 0 : index
    %c0_7 = arith.constant 0 : index
    %27 = vector.load %arg2[%c0, %c0_6, %c0_7] : memref<4x16x1xf32, #tpu.memory_space<vmem>>, vector<4x16x1xf32>
    %28 = vector.shape_cast %27 : vector<4x16x1xf32> to vector<64x1xf32>
    %c0_8 = arith.constant 0 : index
    %c0_9 = arith.constant 0 : index
    %c0_10 = arith.constant 0 : index
    %29 = vector.load %arg1[%c0_8, %c0_9, %c0_10] : memref<4x16x128xf32, #tpu.memory_space<vmem>>, vector<4x16x128xf32>
    %30 = vector.shape_cast %29 : vector<4x16x128xf32> to vector<64x128xf32>
    %31 = vector.broadcast %28 : vector<64x1xf32> to vector<64x128xf32>
    %32 = arith.mulf %30, %31 : vector<64x128xf32>
    %33 = arith.truncf %32 : vector<64x128xf32> to vector<64x128xbf16>
    %c0_11 = arith.constant 0 : index
    %c0_12 = arith.constant 0 : index
    %c0_13 = arith.constant 0 : index
    %c0_14 = arith.constant 0 : index
    %34 = vector.load %arg3[%c0_11, %c0_12, %c0_13, %c0_14] : memref<2x3x128x128xbf16, #tpu.memory_space<vmem>>, vector<1x1x128x128xbf16>
    %35 = vector.shape_cast %34 : vector<1x1x128x128xbf16> to vector<128x128xbf16>
    %cst = arith.constant dense<0.000000e+00> : vector<64x128xf32>
    %36 = tpu.matmul %33, %35, %cst {dimension_numbers = #tpu.dot_dimension_numbers<[1], [0], [0], [1], [0, 0, 1, 1], [], []>} : vector<64x128xbf16>, vector<128x128xbf16>, vector<64x128xf32> -> vector<64x128xf32>
    %c1_i32_15 = arith.constant 1 : i32
    %37 = tpu.dynamic_rotate %36 by %c1_i32_15 dim 0 : vector<64x128xf32>, i32 -> vector<64x128xf32>
    %cst_16 = arith.constant 0.000000e+00 : f32
    %38 = vector.shape_cast %21 : vector<64x1xi1> to vector<64x1xi1>
    %39 = vector.broadcast %38 : vector<64x1xi1> to vector<64x128xi1>
    %40 = vector.broadcast %cst_16 : f32 to vector<64x128xf32>
    %41 = arith.select %39, %37, %40 : vector<64x128xi1>, vector<64x128xf32>
    %c0_17 = arith.constant 0 : index
    %c1 = arith.constant 1 : index
    %c0_18 = arith.constant 0 : index
    %c0_19 = arith.constant 0 : index
    %42 = vector.load %arg3[%c0_17, %c1, %c0_18, %c0_19] : memref<2x3x128x128xbf16, #tpu.memory_space<vmem>>, vector<1x1x128x128xbf16>
    %43 = vector.shape_cast %42 : vector<1x1x128x128xbf16> to vector<128x128xbf16>
    %cst_20 = arith.constant dense<0.000000e+00> : vector<64x128xf32>
    %44 = tpu.matmul %33, %43, %cst_20 {dimension_numbers = #tpu.dot_dimension_numbers<[1], [0], [0], [1], [0, 0, 1, 1], [], []>} : vector<64x128xbf16>, vector<128x128xbf16>, vector<64x128xf32> -> vector<64x128xf32>
    %45 = arith.addf %41, %44 : vector<64x128xf32>
    %c0_21 = arith.constant 0 : index
    %c2 = arith.constant 2 : index
    %c0_22 = arith.constant 0 : index
    %c0_23 = arith.constant 0 : index
    %46 = vector.load %arg3[%c0_21, %c2, %c0_22, %c0_23] : memref<2x3x128x128xbf16, #tpu.memory_space<vmem>>, vector<1x1x128x128xbf16>
    %47 = vector.shape_cast %46 : vector<1x1x128x128xbf16> to vector<128x128xbf16>
    %cst_24 = arith.constant dense<0.000000e+00> : vector<64x128xf32>
    %48 = tpu.matmul %33, %47, %cst_24 {dimension_numbers = #tpu.dot_dimension_numbers<[1], [0], [0], [1], [0, 0, 1, 1], [], []>} : vector<64x128xbf16>, vector<128x128xbf16>, vector<64x128xf32> -> vector<64x128xf32>
    %c63_i32 = arith.constant 63 : i32
    %49 = tpu.dynamic_rotate %48 by %c63_i32 dim 0 : vector<64x128xf32>, i32 -> vector<64x128xf32>
    %cst_25 = arith.constant 0.000000e+00 : f32
    %50 = vector.shape_cast %26 : vector<64x1xi1> to vector<64x1xi1>
    %51 = vector.broadcast %50 : vector<64x1xi1> to vector<64x128xi1>
    %52 = vector.broadcast %cst_25 : f32 to vector<64x128xf32>
    %53 = arith.select %51, %49, %52 : vector<64x128xi1>, vector<64x128xf32>
    %54 = arith.addf %45, %53 : vector<64x128xf32>
    %c0_26 = arith.constant 0 : index
    %c0_27 = arith.constant 0 : index
    %c0_28 = arith.constant 0 : index
    %55 = vector.load %arg4[%c0_26, %c0_27, %c0_28] : memref<2x1x128xf32, #tpu.memory_space<vmem>>, vector<1x1x128xf32>
    %56 = vector.shape_cast %55 : vector<1x1x128xf32> to vector<1x128xf32>
    %57 = vector.broadcast %56 : vector<1x128xf32> to vector<64x128xf32>
    %58 = arith.addf %54, %57 : vector<64x128xf32>
    %cst_29 = arith.constant 5.000000e-01 : f32
    %59 = vector.broadcast %cst_29 : f32 to vector<64x128xf32>
    %60 = arith.mulf %59, %58 : vector<64x128xf32>
    %cst_30 = arith.constant 0.797884583 : f32
    %61 = vector.broadcast %cst_30 : f32 to vector<64x128xf32>
    %62 = arith.mulf %58, %61 : vector<64x128xf32>
    %cst_31 = arith.constant 4.471500e-02 : f32
    %63 = vector.broadcast %cst_31 : f32 to vector<64x128xf32>
    %64 = arith.mulf %63, %58 : vector<64x128xf32>
    %65 = arith.mulf %64, %58 : vector<64x128xf32>
    %cst_32 = arith.constant 1.000000e+00 : f32
    %66 = vector.broadcast %cst_32 : f32 to vector<64x128xf32>
    %67 = arith.addf %66, %65 : vector<64x128xf32>
    %68 = arith.mulf %62, %67 : vector<64x128xf32>
    %69 = math.tanh %68 : vector<64x128xf32>
    %cst_33 = arith.constant 1.000000e+00 : f32
    %70 = vector.broadcast %cst_33 : f32 to vector<64x128xf32>
    %71 = arith.addf %70, %69 : vector<64x128xf32>
    %72 = arith.mulf %60, %71 : vector<64x128xf32>
    %73 = vector.broadcast %28 : vector<64x1xf32> to vector<64x128xf32>
    %74 = arith.mulf %72, %73 : vector<64x128xf32>
    %75 = arith.truncf %74 : vector<64x128xf32> to vector<64x128xbf16>
    %c1_34 = arith.constant 1 : index
    %c0_35 = arith.constant 0 : index
    %c0_36 = arith.constant 0 : index
    %c0_37 = arith.constant 0 : index
    %76 = vector.load %arg3[%c1_34, %c0_35, %c0_36, %c0_37] : memref<2x3x128x128xbf16, #tpu.memory_space<vmem>>, vector<1x1x128x128xbf16>
    %77 = vector.shape_cast %76 : vector<1x1x128x128xbf16> to vector<128x128xbf16>
    %cst_38 = arith.constant dense<0.000000e+00> : vector<64x128xf32>
    %78 = tpu.matmul %75, %77, %cst_38 {dimension_numbers = #tpu.dot_dimension_numbers<[1], [0], [0], [1], [0, 0, 1, 1], [], []>} : vector<64x128xbf16>, vector<128x128xbf16>, vector<64x128xf32> -> vector<64x128xf32>
    %c1_i32_39 = arith.constant 1 : i32
    %79 = tpu.dynamic_rotate %78 by %c1_i32_39 dim 0 : vector<64x128xf32>, i32 -> vector<64x128xf32>
    %cst_40 = arith.constant 0.000000e+00 : f32
    %80 = vector.shape_cast %21 : vector<64x1xi1> to vector<64x1xi1>
    %81 = vector.broadcast %80 : vector<64x1xi1> to vector<64x128xi1>
    %82 = vector.broadcast %cst_40 : f32 to vector<64x128xf32>
    %83 = arith.select %81, %79, %82 : vector<64x128xi1>, vector<64x128xf32>
    %c1_41 = arith.constant 1 : index
    %c1_42 = arith.constant 1 : index
    %c0_43 = arith.constant 0 : index
    %c0_44 = arith.constant 0 : index
    %84 = vector.load %arg3[%c1_41, %c1_42, %c0_43, %c0_44] : memref<2x3x128x128xbf16, #tpu.memory_space<vmem>>, vector<1x1x128x128xbf16>
    %85 = vector.shape_cast %84 : vector<1x1x128x128xbf16> to vector<128x128xbf16>
    %cst_45 = arith.constant dense<0.000000e+00> : vector<64x128xf32>
    %86 = tpu.matmul %75, %85, %cst_45 {dimension_numbers = #tpu.dot_dimension_numbers<[1], [0], [0], [1], [0, 0, 1, 1], [], []>} : vector<64x128xbf16>, vector<128x128xbf16>, vector<64x128xf32> -> vector<64x128xf32>
    %87 = arith.addf %83, %86 : vector<64x128xf32>
    %c1_46 = arith.constant 1 : index
    %c2_47 = arith.constant 2 : index
    %c0_48 = arith.constant 0 : index
    %c0_49 = arith.constant 0 : index
    %88 = vector.load %arg3[%c1_46, %c2_47, %c0_48, %c0_49] : memref<2x3x128x128xbf16, #tpu.memory_space<vmem>>, vector<1x1x128x128xbf16>
    %89 = vector.shape_cast %88 : vector<1x1x128x128xbf16> to vector<128x128xbf16>
    %cst_50 = arith.constant dense<0.000000e+00> : vector<64x128xf32>
    %90 = tpu.matmul %75, %89, %cst_50 {dimension_numbers = #tpu.dot_dimension_numbers<[1], [0], [0], [1], [0, 0, 1, 1], [], []>} : vector<64x128xbf16>, vector<128x128xbf16>, vector<64x128xf32> -> vector<64x128xf32>
    %c63_i32_51 = arith.constant 63 : i32
    %91 = tpu.dynamic_rotate %90 by %c63_i32_51 dim 0 : vector<64x128xf32>, i32 -> vector<64x128xf32>
    %cst_52 = arith.constant 0.000000e+00 : f32
    %92 = vector.shape_cast %26 : vector<64x1xi1> to vector<64x1xi1>
    %93 = vector.broadcast %92 : vector<64x1xi1> to vector<64x128xi1>
    %94 = vector.broadcast %cst_52 : f32 to vector<64x128xf32>
    %95 = arith.select %93, %91, %94 : vector<64x128xi1>, vector<64x128xf32>
    %96 = arith.addf %87, %95 : vector<64x128xf32>
    %c1_53 = arith.constant 1 : index
    %c0_54 = arith.constant 0 : index
    %c0_55 = arith.constant 0 : index
    %97 = vector.load %arg4[%c1_53, %c0_54, %c0_55] : memref<2x1x128xf32, #tpu.memory_space<vmem>>, vector<1x1x128xf32>
    %98 = vector.shape_cast %97 : vector<1x1x128xf32> to vector<1x128xf32>
    %99 = vector.broadcast %98 : vector<1x128xf32> to vector<64x128xf32>
    %100 = arith.addf %96, %99 : vector<64x128xf32>
    %cst_56 = arith.constant 5.000000e-01 : f32
    %101 = vector.broadcast %cst_56 : f32 to vector<64x128xf32>
    %102 = arith.mulf %101, %100 : vector<64x128xf32>
    %cst_57 = arith.constant 0.797884583 : f32
    %103 = vector.broadcast %cst_57 : f32 to vector<64x128xf32>
    %104 = arith.mulf %100, %103 : vector<64x128xf32>
    %cst_58 = arith.constant 4.471500e-02 : f32
    %105 = vector.broadcast %cst_58 : f32 to vector<64x128xf32>
    %106 = arith.mulf %105, %100 : vector<64x128xf32>
    %107 = arith.mulf %106, %100 : vector<64x128xf32>
    %cst_59 = arith.constant 1.000000e+00 : f32
    %108 = vector.broadcast %cst_59 : f32 to vector<64x128xf32>
    %109 = arith.addf %108, %107 : vector<64x128xf32>
    %110 = arith.mulf %104, %109 : vector<64x128xf32>
    %111 = math.tanh %110 : vector<64x128xf32>
    %cst_60 = arith.constant 1.000000e+00 : f32
    %112 = vector.broadcast %cst_60 : f32 to vector<64x128xf32>
    %113 = arith.addf %112, %111 : vector<64x128xf32>
    %114 = arith.mulf %102, %113 : vector<64x128xf32>
    %115 = vector.shape_cast %114 : vector<64x128xf32> to vector<4x16x128xf32>
    %c0_61 = arith.constant 0 : index
    %c0_62 = arith.constant 0 : index
    %c0_63 = arith.constant 0 : index
    %116 = vector.load %arg5[%c0_61, %c0_62, %c0_63] : memref<4x16x128xf32, #tpu.memory_space<vmem>>, vector<4x16x128xf32>
    tpu.vector_store %arg5[%c0_61, %c0_62, %c0_63], %115 {strides = array<i32>} : memref<4x16x128xf32, #tpu.memory_space<vmem>>, vector<4x16x128xf32>,
    return
  }
  func.func @transform_0(%arg0: i32) -> (i32, i32, i32) {
    %c0_i32 = arith.constant 0 : i32
    %c0_i32_0 = arith.constant 0 : i32
    %c0_i32_1 = arith.constant 0 : i32
    return %arg0, %c0_i32, %c0_i32_0 : i32, i32, i32
  }
  func.func @transform_1(%arg0: i32) -> (i32, i32, i32) {
    %c0_i32 = arith.constant 0 : i32
    %c0_i32_0 = arith.constant 0 : i32
    %c0_i32_1 = arith.constant 0 : i32
    return %arg0, %c0_i32, %c0_i32_0 : i32, i32, i32
  }
  func.func @transform_2(%arg0: i32) -> (i32, i32, i32, i32) {
    %c0_i32 = arith.constant 0 : i32
    %c0_i32_0 = arith.constant 0 : i32
    %c0_i32_1 = arith.constant 0 : i32
    %c0_i32_2 = arith.constant 0 : i32
    %c0_i32_3 = arith.constant 0 : i32
    return %c0_i32, %c0_i32_0, %c0_i32_1, %c0_i32_2 : i32, i32, i32, i32
  }
  func.func @transform_3(%arg0: i32) -> (i32, i32, i32) {
    %c0_i32 = arith.constant 0 : i32
    %c0_i32_0 = arith.constant 0 : i32
    %c0_i32_1 = arith.constant 0 : i32
    %c0_i32_2 = arith.constant 0 : i32
    return %c0_i32, %c0_i32_0, %c0_i32_1 : i32, i32, i32
  }
  func.func @transform_4(%arg0: i32) -> (i32, i32, i32) {
    %c0_i32 = arith.constant 0 : i32
    %c0_i32_0 = arith.constant 0 : i32
    %c0_i32_1 = arith.constant 0 : i32
    return %arg0, %c0_i32, %c0_i32_0 : i32, i32, i32
  }
}

</mosaic_0001>

<bundles_post_ra>
// kernel: tpu_custom_call.1
= control target key start
LH: loop header
LB: loop body
LE: loop exit
PB: predicated region body
PF: predicated region fallthrough
CT: control target
= control target key end

     0   :  { %9 = vsyncpa [#allocation3], 0  ;;  %s2160_s0 = inlined_call_operand.vmem [shape: f32[4,16,128], index: 0, kind: input, shape index: {}]   ;;  %s2161_s1 = inlined_call_operand.vmem [shape: f32[4,16,1], index: 1, kind: input, shape index: {}]   ;;  %s2162_s2 = inlined_call_operand.hbm [shape: bf16[2,3,128,128], index: 2, kind: input, shape index: {}]   ;;  %s2163_s3 = inlined_call_operand.vmem [shape: f32[2,1,128], index: 3, kind: input, shape index: {}]   ;;  %s2164_s4 = inlined_call_operand.hbm [shape: f32[4,16,128], index: 4, kind: output, shape index: {}]  }
   0x1   :  { %10 = vsyncpa [#allocation4], 0  ;;  %s1811_s15 = smov [#allocation2]   ;;  %s1763_s19 = scalar_lea.hbm %s2162_s2, 6144 }
   0x2   :  { %s20_s16 = sshll.u32 %s1811_s15, 4  ;;  %p1764_p0 = scmp.ne.s32.totalorder %s2162_s2, %s1763_s19  ;;  %s21_s16 = int_to_ptr.vmem [resolvable:$true] %s20_s16 }
   0x3   :  { %p1767_p1 = scmp.lt.u32.totalorder %s1763_s19, %s2162_s2 }
   0x5   :  { %p1769_p2 = pnand %p1767_p1, %p1764_p0 }
   0x7   :  { %1772 = shalt.err (!%p1769_p2)
}
   0x8   :  { %s1773_s24 = scalar_lea.vmem %s21_s16, 6144  ;;  %p1778_p4 = scmp.lt.s32.totalorder %s21_s16, %s21_s16 }
   0x9   :  { %p1774_p3 = scmp.ne.s32.totalorder %s21_s16, %s1773_s24  ;;  %p1779_p5 = scmp.lt.s32.totalorder %s1773_s24, %s1773_s24 }
   0xb   :  { %p1780_p6 = por %p1779_p5, %p1778_p4 }
   0xd   :  { %p1781_p7 = pnand %p1780_p6, %p1774_p3 }
   0xf   :  { %1784 = shalt.err (!%p1781_p7)
}
  0x10   :  { %s1812_s25 = smov 64   ;;  %s1813_s26 = smov 4  }
  0x11   :  { %26 = dma.hbm_to_vmem [thread:$0]  %s2162_s2, 6144, %s21_s16, [#allocation3], %s1812_s25, %s1812_s25, %s1813_s26  }
  0x12   :  { %1807 = dma.done.wait [#allocation3], 6144  }
  0x13   :  { %1808 = vsyncadd [#allocation3], 4294961152  ;;  %v1814_v0 = vmov 0   ;;  %v188_v1 = vld [vmem:[%s2161_s1 + $0x10] sm:$0xff]  ;;  %v186_v2 = vld [vmem:[%s2161_s1] sm:$0xff] }
  0x14   :  { %1682 = vset.pattern.permute.xlu1 %v1814_v0  ;;  %1681 = vset.pattern.permute.xlu0 %v1814_v0  ;;  %v189_v3 = vld [vmem:[%s2161_s1 + $0x18] sm:$0xff]  ;;  %v187_v4 = vld [vmem:[%s2161_s1 + $0x8] sm:$0xff]  ;;  %v1683_v5 = vld [vmem:[#allocation2] sm:$0xff]  }
  0x15   :  { %214 = vperm.xlu1 %1682, %v188_v1   ;;  %204 = vperm.xlu0 %1681, %v186_v2   ;;  %v191_v6 = vld [vmem:[%s2161_s1 + $0x28] sm:$0xff]  ;;  %v190_v7 = vld [vmem:[%s2161_s1 + $0x20] sm:$0xff]  ;;  %v1687_v11 = vld [vmem:[#allocation2 + $0x10] sm:$0xff]  }
  0x16   :  { %v1684_v8 = vld [vmem:[#allocation2 + $0x40] sm:$0xff]   ;;  %v1685_v9 = vld [vmem:[#allocation2 + $0x8] sm:$0xff]   ;;  %1530 = vmatprep.subr.bf16.mxu0 %v1683_v5  ;;  %v1688_v12 = vld [vmem:[#allocation2 + $0x50] sm:$0xff]  }
  0x17   :  { %1554 = vmatprep.subr.bf16.mxu1 %v1684_v8  ;;  %v1686_v10 = vld [vmem:[#allocation2 + $0x48] sm:$0xff]   ;;  %1531 = vmatpush3.bf16.msra.mxu0 %v1683_v5  ;;  %v193_v13 = vld [vmem:[%s2161_s1 + $0x38] sm:$0xff]  ;;  %v192_v14 = vld [vmem:[%s2161_s1 + $0x30] sm:$0xff] }
  0x18   :  { %1555 = vmatpush3.bf16.msra.mxu1 %v1684_v8  ;;  %1532 = vmatprep.subr.bf16.mxu0 %v1685_v9  ;;  %v1689_v15 = vld [vmem:[#allocation2 + $0x18] sm:$0xff]   ;;  %v1691_v17 = vld [vmem:[#allocation2 + $0x20] sm:$0xff]   ;;  %v1693_v19 = vld [vmem:[#allocation2 + $0x28] sm:$0xff]  }
  0x19   :  { %219 = vperm.xlu1 %1682, %v189_v3   ;;  %209 = vperm.xlu0 %1681, %v187_v4   ;;  %v1690_v16 = vld [vmem:[#allocation2 + $0x58] sm:$0xff]   ;;  %v1692_v18 = vld [vmem:[#allocation2 + $0x60] sm:$0xff]   ;;  %v1694_v20 = vld [vmem:[#allocation2 + $0x68] sm:$0xff]  }
  0x1a   :  { %1556 = vmatprep.subr.bf16.mxu1 %v1686_v10  ;;  %v1695_v21 = vld [vmem:[#allocation2 + $0x30] sm:$0xff]   ;;  %v1697_v23 = vld [vmem:[#allocation2 + $0x38] sm:$0xff]   ;;  %v1699_v25 = vld [vmem:[#allocation2 + $0x80] sm:$0xff]  }
  0x1b   :  { %1533 = vmatpush3.bf16.msra.mxu0 %v1685_v9  ;;  %v1696_v22 = vld [vmem:[#allocation2 + $0x70] sm:$0xff]   ;;  %v1698_v24 = vld [vmem:[#allocation2 + $0x78] sm:$0xff]   ;;  %v194_v29 = vld [vmem:[%s2160_s0] sm:$0xff] }
  0x1c   :  { %1557 = vmatpush3.bf16.msra.mxu1 %v1686_v10  ;;  %1534 = vmatprep.subr.bf16.mxu0 %v1687_v11  ;;  %v196_v28 = vld [vmem:[%s2160_s0 + $0x10] sm:$0xff]  ;;  %v197_v30 = vld [vmem:[%s2160_s0 + $0x18] sm:$0xff]  ;;  %v195_v31 = vld [vmem:[%s2160_s0 + $0x8] sm:$0xff] }
  0x1d   :  { %229 = vperm.xlu1 %1682, %v191_v6   ;;  %224 = vperm.xlu0 %1681, %v190_v7   ;;  %v199_v38 = vld [vmem:[%s2160_s0 + $0x28] sm:$0xff]  ;;  %v198_v39 = vld [vmem:[%s2160_s0 + $0x20] sm:$0xff]  ;;  %v201_v47 = vld [vmem:[%s2160_s0 + $0x38] sm:$0xff] }
  0x1e   :  { %1558 = vmatprep.subr.bf16.mxu1 %v1688_v12  ;;  %v1700_v44 = vld [vmem:[#allocation2 + $0x88] sm:$0xff]   ;;  %v200_v48 = vld [vmem:[%s2160_s0 + $0x30] sm:$0xff]  ;;  %v1702_v56 = vld [vmem:[#allocation2 + $0x98] sm:$0xff]  }
  0x1f   :  { %1535 = vmatpush3.bf16.msra.mxu0 %v1687_v11  ;;  %v1701_v52 = vld [vmem:[#allocation2 + $0x90] sm:$0xff]   ;;  %v1703_v57 = vld [vmem:[#allocation2 + $0xa0] sm:$0xff]   ;;  %v1704_v58 = vld [vmem:[#allocation2 + $0xa8] sm:$0xff]  }
  0x20   :  { %1559 = vmatpush3.bf16.msra.mxu1 %v1688_v12  ;;  %1536 = vmatprep.subr.bf16.mxu0 %v1689_v15  ;;  %v1705_v59 = vld [vmem:[#allocation2 + $0xb0] sm:$0xff]   ;;  %v1706_v60 = vld [vmem:[#allocation2 + $0xb8] sm:$0xff]   ;;  %v1707_v61 = vld [vmem:[#allocation2 + $0xc0] sm:$0xff]  }
  0x21   :  { %239 = vperm.xlu1 %1682, %v193_v13   ;;  %234 = vperm.xlu0 %1681, %v192_v14   ;;  %v1708_v62 = vld [vmem:[#allocation2 + $0x100] sm:$0xff]   ;;  %v1709_v63 = vld [vmem:[#allocation2 + $0xc8] sm:$0xff]   ;;  %v1711_v1 = vld [vmem:[#allocation2 + $0xd0] sm:$0xff]   ;;  %v33_v14 = vlaneseq }
  0x22   :  { %1560 = vmatprep.subr.bf16.mxu1 %v1690_v16  ;;  %v1710_v0 = vld [vmem:[#allocation2 + $0x108] sm:$0xff]   ;;  %v1712_v2 = vld [vmem:[#allocation2 + $0x110] sm:$0xff]   ;;  %v1713_v3 = vld [vmem:[#allocation2 + $0xd8] sm:$0xff]  }
  0x23   :  { %1537 = vmatpush3.bf16.msra.mxu0 %v1689_v15  ;;  %v1714_v4 = vld [vmem:[#allocation2 + $0x118] sm:$0xff]   ;;  %v1715_v5 = vld [vmem:[#allocation2 + $0xe0] sm:$0xff]   ;;  %v1717_v7 = vld [vmem:[#allocation2 + $0xe8] sm:$0xff]   ;;  %v1930_v15 = vshrl.u32 %v33_v14, 7 }
  0x24   :  { %1561 = vmatpush3.bf16.msra.mxu1 %v1690_v16  ;;  %1538 = vmatprep.subr.bf16.mxu0 %v1691_v17  ;;  %v1716_v6 = vld [vmem:[#allocation2 + $0x120] sm:$0xff]   ;;  %v1718_v8 = vld [vmem:[#allocation2 + $0x128] sm:$0xff]   ;;  %v1719_v9 = vld [vmem:[#allocation2 + $0xf0] sm:$0xff]  }
  0x25   :  { %1562 = vmatprep.subr.bf16.mxu1 %v1692_v18  ;;  %v1720_v10 = vld [vmem:[#allocation2 + $0x130] sm:$0xff]   ;;  %v1721_v11 = vld [vmem:[#allocation2 + $0xf8] sm:$0xff]   ;;  %v1927_v13 = vld [vmem:[#allocation2 + $0x140] sm:$0xff]   ;;  %v36_v16 = vadd.s32 16, %v1930_v15  ;;  %vm391_vm0 = vcmp.lt.s32.totalorder %v1930_v15, 1  ;;  %vm700_vm5 = vcmp.lt.s32.totalorder %v1930_v15, 7 }
  0x26   :  { %v1722_v12 = vld [vmem:[#allocation2 + $0x138] sm:$0xff]  }
  0x27   :  { %1539 = vmatpush3.bf16.msra.mxu0 %v1691_v17 }
  0x28   :  { %1563 = vmatpush3.bf16.msra.mxu1 %v1692_v18  ;;  %1540 = vmatprep.subr.bf16.mxu0 %v1693_v19 }
  0x29   :  { %1564 = vmatprep.subr.bf16.mxu1 %v1694_v20 }
  0x2b   :  { %1541 = vmatpush3.bf16.msra.mxu0 %v1693_v19  ;;  %v60_v19 = vand.u32 15, %v36_v16 }
  0x2c   :  { %1565 = vmatpush3.bf16.msra.mxu1 %v1694_v20  ;;  %1542 = vmatprep.subr.bf16.mxu0 %v1695_v21 }
  0x2d   :  { %1566 = vmatprep.subr.bf16.mxu1 %v1696_v22  ;;  %vm1935_vm1 = vcmp.ge.s32.totalorder %v60_v19, 1 }
  0x2f   :  { %1543 = vmatpush3.bf16.msra.mxu0 %v1695_v21 }
  0x30   :  { %1567 = vmatpush3.bf16.msra.mxu1 %v1696_v22  ;;  %1544 = vmatprep.subr.bf16.mxu0 %v1697_v23 }
  0x31   :  { %1568 = vmatprep.subr.bf16.mxu1 %v1698_v24 }
  0x33   :  { %1545 = vmatpush3.bf16.msra.mxu0 %v1697_v23 }
  0x34   :  { %1569 = vmatpush3.bf16.msra.mxu1 %v1698_v24  ;;  %1578 = vmatprep.subr.bf16.mxu0 %v1699_v25  ;;  %v38_v24 = vadd.s32 32, %v1930_v15 }
  0x35   :  { %1602 = vmatprep.subr.bf16.mxu1 %v1707_v61 }
  0x94   :  { %v1879_v26 = vpop.permute.xlu1 %214  ;;  %v1881_v27 = vpop.permute.xlu0 %204 }
  0x95   :  { %v244_v34 = vmul.f32 %v1879_v26, %v196_v28  ;;  %v242_v35 = vmul.f32 %v1881_v27, %v194_v29 }
  0x98   :  { %v1895_v32 = vpop.permute.xlu1 %219  ;;  %v1897_v33 = vpop.permute.xlu0 %209 }
  0x99   :  { %v245_v36 = vmul.f32 %v1895_v32, %v197_v30  ;;  %v243_v37 = vmul.f32 %v1897_v33, %v195_v31 }
  0x9b   :  { %v251_v40 = vpack.c.bf16 %v245_v36, %v244_v34  ;;  %v250_v41 = vpack.c.bf16 %v243_v37, %v242_v35  ;;  %v40_v36 = vadd.s32 48, %v1930_v15 }
  0x9c   :  { %v1909_v42 = vpop.permute.xlu1 %229  ;;  %v1911_v43 = vpop.permute.xlu0 %224 }
  0x9d   :  { %v247_v45 = vmul.f32 %v1909_v42, %v199_v38  ;;  %v246_v46 = vmul.f32 %v1911_v43, %v198_v39  ;;  %1546 = vmatprep.mubr.bf16.mxu0 %v250_v41  ;;  %1570 = vmatprep.mubr.bf16.mxu1 %v250_v41 }
  0x9e   :  { %1547 = vmatmul.mubr.bf16.vlgmr.msra.gmra.mrb[0].mxu0 %v251_v40  ;;  %1571 = vmatmul.mubr.bf16.vlgmr.msra.gmra.mrb[0].mxu1 %v251_v40 }
  0x9f   :  { %v252_v49 = vpack.c.bf16 %v247_v45, %v246_v46  ;;  %1579 = vmatpush3.bf16.msra.mxu0 %v1699_v25  ;;  %1603 = vmatpush3.bf16.msra.mxu1 %v1707_v61  ;;  %v46_v46 = vand.u32 15, %v1930_v15 }
  0xa0   :  { %v1921_v50 = vpop.permute.xlu1 %239  ;;  %v1923_v51 = vpop.permute.xlu0 %234  ;;  %1580 = vmatprep.subr.bf16.mxu0 %v1700_v44  ;;  %1604 = vmatprep.subr.bf16.mxu1 %v1709_v63 }
  0xa1   :  { %v249_v53 = vmul.f32 %v1921_v50, %v201_v47  ;;  %v248_v54 = vmul.f32 %v1923_v51, %v200_v48  ;;  %1550 = vmatprep.mubr.bf16.mxu0 %v252_v49  ;;  %1574 = vmatprep.mubr.bf16.mxu1 %v252_v49  ;;  %vm1955_vm3 = vcmp.ge.s32.totalorder %v46_v46, 1 }
  0xa3   :  { %v253_v55 = vpack.c.bf16 %v249_v53, %v248_v54  ;;  %1581 = vmatpush3.bf16.msra.mxu0 %v1700_v44  ;;  %1605 = vmatpush3.bf16.msra.mxu1 %v1709_v63 }
  0xa4   :  { %1582 = vmatprep.subr.bf16.mxu0 %v1701_v52  ;;  %1606 = vmatprep.subr.bf16.mxu1 %v1711_v1 }
  0xa6   :  { %1551 = vmatmul.mubr.bf16.gmra.mrb[4].mxu0 %v253_v55  ;;  %1575 = vmatmul.mubr.bf16.gmra.mrb[4].mxu1 %v253_v55 }
  0xa7   :  { %1583 = vmatpush3.bf16.msra.mxu0 %v1701_v52  ;;  %1594 = vmatprep.mubr.bf16.mxu0 %v250_v41  ;;  %v74_v41 = vand.u32 15, %v38_v24  ;;  %v88_v52 = vand.u32 15, %v40_v36 }
  0xa8   :  { %1584 = vmatprep.subr.bf16.mxu0 %v1702_v56  ;;  %1607 = vmatpush3.bf16.msra.mxu1 %v1711_v1  ;;  %v1457_v1 = vld [vmem:[%s2163_s3 + $0x1] ss:$0 sm:$0xff] }
  0xa9   :  { %1608 = vmatprep.subr.bf16.mxu1 %v1713_v3  ;;  %vm1951_vm2 = vcmp.ge.s32.totalorder %v74_v41, 1  ;;  %vm1961_vm4 = vcmp.ge.s32.totalorder %v88_v52, 1 }
  0xab   :  { %1585 = vmatpush3.bf16.msra.mxu0 %v1702_v56 }
  0xac   :  { %1586 = vmatprep.subr.bf16.mxu0 %v1703_v57  ;;  %1609 = vmatpush3.bf16.msra.mxu1 %v1713_v3 }
  0xad   :  { %1610 = vmatprep.subr.bf16.mxu1 %v1715_v5 }
  0xaf   :  { %1587 = vmatpush3.bf16.msra.mxu0 %v1703_v57 }
  0xb0   :  { %1588 = vmatprep.subr.bf16.mxu0 %v1704_v58  ;;  %1611 = vmatpush3.bf16.msra.mxu1 %v1715_v5 }
  0xb1   :  { %1612 = vmatprep.subr.bf16.mxu1 %v1717_v7 }
  0xb3   :  { %1589 = vmatpush3.bf16.msra.mxu0 %v1704_v58 }
  0xb4   :  { %1590 = vmatprep.subr.bf16.mxu0 %v1705_v59  ;;  %1613 = vmatpush3.bf16.msra.mxu1 %v1717_v7 }
  0xb5   :  { %1614 = vmatprep.subr.bf16.mxu1 %v1719_v9 }
  0xb7   :  { %1591 = vmatpush3.bf16.msra.mxu0 %v1705_v59 }
  0xb8   :  { %1592 = vmatprep.subr.bf16.mxu0 %v1706_v60  ;;  %1615 = vmatpush3.bf16.msra.mxu1 %v1719_v9 }
  0xb9   :  { %1616 = vmatprep.subr.bf16.mxu1 %v1721_v11 }
  0xbb   :  { %1593 = vmatpush3.bf16.msra.mxu0 %v1706_v60 }
  0xbc   :  { %1626 = vmatprep.subr.bf16.mxu0 %v1708_v62  ;;  %1617 = vmatpush3.bf16.msra.mxu1 %v1721_v11 }
  0xbd   :  { %1650 = vmatprep.subr.bf16.mxu1 %v1927_v13 }
  0xbe   :  { %1595 = vmatmul.mubr.bf16.vlgmr.msra.gmra.mrb[8].mxu0 %v251_v40 }
  0xbf   :  { %1598 = vmatprep.mubr.bf16.mxu0 %v252_v49  ;;  %1627 = vmatpush3.bf16.msra.mxu0 %v1708_v62 }
  0xc0   :  { %1628 = vmatprep.subr.bf16.mxu0 %v1710_v0 }
  0xc3   :  { %1629 = vmatpush3.bf16.msra.mxu0 %v1710_v0 }
  0xc4   :  { %1630 = vmatprep.subr.bf16.mxu0 %v1712_v2 }
  0xc6   :  { %1599 = vmatmul.mubr.bf16.gmra.mrb[12].mxu0 %v253_v55 }
  0xc7   :  { %1631 = vmatpush3.bf16.msra.mxu0 %v1712_v2 }
  0xc8   :  { %1632 = vmatprep.subr.bf16.mxu0 %v1714_v4 }
  0xcb   :  { %1633 = vmatpush3.bf16.msra.mxu0 %v1714_v4 }
  0xcc   :  { %1634 = vmatprep.subr.bf16.mxu0 %v1716_v6 }
  0xcf   :  { %1635 = vmatpush3.bf16.msra.mxu0 %v1716_v6 }
  0xd0   :  { %1636 = vmatprep.subr.bf16.mxu0 %v1718_v8 }
  0xd3   :  { %1637 = vmatpush3.bf16.msra.mxu0 %v1718_v8 }
  0xd4   :  { %1638 = vmatprep.subr.bf16.mxu0 %v1720_v10 }
  0xd7   :  { %1639 = vmatpush3.bf16.msra.mxu0 %v1720_v10 }
  0xd8   :  { %1640 = vmatprep.subr.bf16.mxu0 %v1722_v12 }
  0xdb   :  { %1641 = vmatpush3.bf16.msra.mxu0 %v1722_v12 }
 0x171   :  { %v1548_v17 = vpop.f32.mrb[0].mxu0  ;;  %v1572_v18 = vpop.f32.mrb[0].mxu1 }
 0x172   :  { %v352_v20 = vpop.f32.mrb[1].mxu0  ;;  %v523_v21 = vpop.f32.mrb[1].mxu1  ;;  %v385_v25 = vrot.slane %v1548_v17, 7  ;;  %v35_v17 = vadd.s32 8, %v1930_v15 }
 0x173   :  { %v1549_v22 = vpop.f32.mrb[2].mxu0  ;;  %v1573_v23 = vpop.f32.mrb[2].mxu1  ;;  %v383_v31 = vrot.slane %v352_v20, 7 }
 0x174   :  { %v386_v28 = vrot.slane %v1549_v22, 7  ;;  %v355_v29 = vpop.f32.mrb[3].mxu0  ;;  %v526_v30 = vpop.f32.mrb[3].mxu1  ;;  %v53_v19 = vand.u32 15, %v35_v17  ;;  %v37_v22 = vadd.s32 24, %v1930_v15 }
 0x175   :  { %v384_v35 = vrot.slane %v355_v29, 7  ;;  %v39_v29 = vadd.s32 40, %v1930_v15 }
 0x176   :  { %v396_v37 = vsel %vm391_vm0, %v385_v25, %v386_v28  ;;  %vm1986_vm6 = vcmp.lt.s32.totalorder %v53_v19, 15 }
 0x177   :  { %v1942_v38 = vadd.f32 %v1573_v23, %v396_v37  ;;  %v397_v39 = vsel %vm391_vm0, %v384_v35, %v385_v25  ;;  %v398_v40 = vsel %vm391_vm0, %v383_v31, %v384_v35  ;;  %v1431_v37 = vld [vmem:[%s2163_s3] ss:$0 sm:$0xff]  ;;  %v81_v52 = vand.u32 15, %v39_v29  ;;  %s1815_s3 = smov [#allocation5]  }
 0x178   :  { %v418_v44 = vsel %vm1935_vm1, %v397_v39, 0.0  ;;  %v555_v45 = vadd.f32 %v526_v30, %v398_v40  ;;  %v67_v39 = vand.u32 15, %v37_v22  ;;  %s1395_s9 = sshll.u32 %s1815_s3, 4  ;;  %s1396_s9 = int_to_ptr.vmem [resolvable:$true] %s1395_s9 }
 0x179   :  { %v556_v47 = vadd.f32 %v1572_v18, %v418_v44  ;;  %v1552_v48 = vpop.f32.mrb[4].mxu0  ;;  %v1576_v49 = vpop.f32.mrb[4].mxu1  ;;  %vm2014_vm9 = vcmp.lt.s32.totalorder %v81_v52, 15  ;;  %s1785_s10 = scalar_lea.vmem %s1396_s9, 1024  ;;  %p1790_p9 = scmp.lt.s32.totalorder %s1396_s9, %s1396_s9 }
 0x17a   :  { %v368_v53 = vpop.f32.mrb[5].mxu0  ;;  %v539_v54 = vpop.f32.mrb[5].mxu1  ;;  %v389_v59 = vrot.slane %v1552_v48, 7  ;;  %vm2006_vm7 = vcmp.lt.s32.totalorder %v67_v39, 15  ;;  %p1786_p8 = scmp.ne.s32.totalorder %s1396_s9, %s1785_s10  ;;  %p1791_p10 = scmp.lt.s32.totalorder %s1785_s10, %s1785_s10 }
 0x17b   :  { %v387_v55 = vrot.slane %v368_v53, 7  ;;  %v1553_v57 = vpop.f32.mrb[6].mxu0  ;;  %v1577_v58 = vpop.f32.mrb[6].mxu1 }
 0x17c   :  { %v390_v61 = vrot.slane %v1553_v57, 7  ;;  %v371_v62 = vpop.f32.mrb[7].mxu0  ;;  %v542_v63 = vpop.f32.mrb[7].mxu1  ;;  %p1792_p11 = por %p1791_p10, %p1790_p9 }
 0x17d   :  { %v395_v0 = vsel %vm391_vm0, %v386_v28, %v387_v55  ;;  %v388_v2 = vrot.slane %v371_v62, 7 }
 0x17e   :  { %v420_v3 = vsel %vm1951_vm2, %v395_v0, 0.0  ;;  %v399_v4 = vsel %vm391_vm0, %v390_v61, %v383_v31  ;;  %v392_v5 = vsel %vm391_vm0, %v389_v59, %v390_v61  ;;  %p1793_p12 = pnand %p1792_p11, %p1786_p8 }
 0x17f   :  { %v1971_v6 = vadd.f32 %v539_v54, %v420_v3  ;;  %v416_v7 = vsel %vm1955_vm3, %v399_v4, 0.0  ;;  %v561_v8 = vadd.f32 %v1577_v58, %v392_v5  ;;  %v393_v9 = vsel %vm391_vm0, %v388_v2, %v389_v59 }
 0x180   :  { %v554_v10 = vadd.f32 %v523_v21, %v416_v7  ;;  %v422_v11 = vsel %vm1961_vm4, %v393_v9, 0.0  ;;  %v394_v12 = vsel %vm391_vm0, %v387_v55, %v388_v2  ;;  %v41_v21 = vadd.s32 56, %v1930_v15 }
 0x181   :  { %v560_v14 = vadd.f32 %v1576_v49, %v422_v11  ;;  %v559_v16 = vadd.f32 %v542_v63, %v394_v12 }
 0x182   :  { %v95_v46 = vand.u32 15, %v41_v21 }
 0x184   :  { %vm2010_vm8 = vcmp.lt.s32.totalorder %v95_v46, 15 }
 0x191   :  { %v1596_v18 = vpop.f32.mrb[8].mxu0 }
 0x192   :  { %v661_v20 = vpop.f32.mrb[9].mxu0  ;;  %v694_v24 = vrot.slane %v1596_v18, 1 }
 0x193   :  { %v1597_v23 = vpop.f32.mrb[10].mxu0  ;;  %v692_v30 = vrot.slane %v661_v20, 1 }
 0x194   :  { %v695_v25 = vrot.slane %v1597_v23, 1  ;;  %v664_v28 = vpop.f32.mrb[11].mxu0 }
 0x195   :  { %v693_v35 = vrot.slane %v664_v28, 1 }
 0x196   :  { %v705_v36 = vsel %vm700_vm5, %v694_v24, %v695_v25 }
 0x197   :  { %v735_v40 = vadd.f32 %v705_v36, %v556_v47  ;;  %v706_v41 = vsel %vm700_vm5, %v693_v35, %v694_v24  ;;  %v707_v44 = vsel %vm700_vm5, %v692_v30, %v693_v35 }
 0x198   :  { %v726_v48 = vsel %vm1986_vm6, %v706_v41, 0.0  ;;  %v733_v49 = vadd.f32 %v707_v44, %v554_v10 }
 0x199   :  { %v2001_v53 = vadd.f32 %v1431_v37, %v735_v40  ;;  %v734_v54 = vadd.f32 %v726_v48, %v555_v45  ;;  %v1600_v55 = vpop.f32.mrb[12].mxu0 }
 0x19a   :  { %v2003_v57 = vadd.f32 %v1431_v37, %v733_v49  ;;  %v677_v58 = vpop.f32.mrb[13].mxu0  ;;  %v698_v63 = vrot.slane %v1600_v55, 1 }
 0x19b   :  { %v774_v47 = vmul.f32 0.044715, %v2001_v53  ;;  %v1601_v62 = vpop.f32.mrb[14].mxu0  ;;  %v696_v0 = vrot.slane %v677_v58, 1  ;;  %v766_v4 = vmul.f32 0.7978846, %v2001_v53  ;;  %v2020_v7 = vadd.f32 %v1431_v37, %v734_v54 }
 0x19c   :  { %v699_v2 = vrot.slane %v1601_v62, 1  ;;  %v680_v3 = vpop.f32.mrb[15].mxu0  ;;  %v772_v10 = vmul.f32 0.044715, %v2003_v57  ;;  %v764_v48 = vmul.f32 0.7978846, %v2003_v57 }
 0x19d   :  { %v782_v5 = vmul.f32 %v774_v47, %v2001_v53  ;;  %v697_v9 = vrot.slane %v680_v3, 1  ;;  %v704_v11 = vsel %vm700_vm5, %v695_v25, %v696_v0  ;;  %v773_v28 = vmul.f32 0.044715, %v2020_v7 }
 0x19e   :  { %v701_v12 = vsel %vm700_vm5, %v698_v63, %v699_v2  ;;  %v708_v17 = vsel %vm700_vm5, %v699_v2, %v692_v30  ;;  %v728_v19 = vsel %vm2006_vm7, %v704_v11, 0.0  ;;  %v780_v40 = vmul.f32 %v772_v10, %v2003_v57 }
 0x19f   :  { %v790_v18 = vadd.f32 1.0, %v782_v5  ;;  %v732_v20 = vsel %vm2010_vm8, %v708_v17, 0.0  ;;  %v739_v22 = vadd.f32 %v701_v12, %v560_v14  ;;  %v736_v23 = vadd.f32 %v728_v19, %v1942_v38 }
 0x1a0   :  { %v740_v21 = vadd.f32 %v732_v20, %v561_v8  ;;  %v702_v24 = vsel %vm700_vm5, %v697_v9, %v698_v63  ;;  %v703_v25 = vsel %vm700_vm5, %v696_v0, %v697_v9  ;;  %v781_v49 = vmul.f32 %v773_v28, %v2020_v7 }
 0x1a1   :  { %v730_v29 = vsel %vm2014_vm9, %v702_v24, 0.0  ;;  %v737_v30 = vadd.f32 %v703_v25, %v1971_v6  ;;  %v798_v35 = vmul.f32 %v790_v18, %v766_v4  ;;  %v751_v36 = vadd.f32 %v1431_v37, %v736_v23 }
 0x1a2   :  { %v738_v39 = vadd.f32 %v730_v29, %v559_v16  ;;  %v2042_v14 = vadd.f32 %v1431_v37, %v739_v22  ;;  %v2044_v38 = vadd.f32 %v1431_v37, %v740_v21  ;;  %v788_v52 = vadd.f32 1.0, %v780_v40 }
 0x1a3   :  { %v752_v8 = vadd.f32 %v1431_v37, %v737_v30  ;;  %v775_v41 = vmul.f32 0.044715, %v751_v36  ;;  %1731 = vtanh.f32 %v798_v35  ;;  %v765_v16 = vmul.f32 0.7978846, %v2020_v7 }
 0x1a4   :  { %v753_v44 = vadd.f32 %v1431_v37, %v738_v39  ;;  %v778_v55 = vmul.f32 0.044715, %v2042_v14  ;;  %v779_v58 = vmul.f32 0.044715, %v2044_v38  ;;  %v789_v47 = vadd.f32 1.0, %v781_v49 }
 0x1a5   :  { %v776_v46 = vmul.f32 0.044715, %v752_v8  ;;  %v783_v6 = vmul.f32 %v775_v41, %v751_v36  ;;  %v796_v62 = vmul.f32 %v788_v52, %v764_v48  ;;  %v767_v63 = vmul.f32 0.7978846, %v751_v36 }
 0x1a6   :  { %v777_v54 = vmul.f32 0.044715, %v753_v44  ;;  %v797_v3 = vmul.f32 %v789_v47, %v765_v16  ;;  %v768_v4 = vmul.f32 0.7978846, %v752_v8  ;;  %v769_v9 = vmul.f32 0.7978846, %v753_v44 }
 0x1a7   :  { %v791_v0 = vadd.f32 1.0, %v783_v6  ;;  %v784_v37 = vmul.f32 %v776_v46, %v752_v8  ;;  %1733 = vtanh.f32 %v796_v62  ;;  %v786_v12 = vmul.f32 %v778_v55, %v2042_v14 }
 0x1a8   :  { %v785_v2 = vmul.f32 %v777_v54, %v753_v44  ;;  %1735 = vtanh.f32 %v797_v3  ;;  %v787_v17 = vmul.f32 %v779_v58, %v2044_v38  ;;  %v770_v20 = vmul.f32 0.7978846, %v2042_v14 }
 0x1a9   :  { %v799_v5 = vmul.f32 %v791_v0, %v767_v63  ;;  %v792_v10 = vadd.f32 1.0, %v784_v37  ;;  %v771_v22 = vmul.f32 0.7978846, %v2044_v38  ;;  %v794_v23 = vadd.f32 1.0, %v786_v12 }
 0x1aa   :  { %v793_v11 = vadd.f32 1.0, %v785_v2  ;;  %v795_v21 = vadd.f32 1.0, %v787_v17  ;;  %v756_v35 = vmul.f32 0.5, %v2003_v57  ;;  %v758_v41 = vmul.f32 0.5, %v2001_v53  ;;  %v1724_v17 = vld [vmem:[#allocation2 + $0x148] sm:$0xff]  }
 0x1ab   :  { %1737 = vtanh.f32 %v799_v5  ;;  %v800_v18 = vmul.f32 %v792_v10, %v768_v4  ;;  %v802_v24 = vmul.f32 %v794_v23, %v770_v20  ;;  %v757_v48 = vmul.f32 0.5, %v2020_v7  ;;  %v1725_v20 = vld [vmem:[#allocation2 + $0x150] sm:$0xff]  }
 0x1ac   :  { %v801_v19 = vmul.f32 %v793_v11, %v769_v9  ;;  %v803_v25 = vmul.f32 %v795_v21, %v771_v22  ;;  %v759_v6 = vmul.f32 0.5, %v751_v36  ;;  %v760_v0 = vmul.f32 0.5, %v752_v8  ;;  %v1726_v22 = vld [vmem:[#allocation2 + $0x158] sm:$0xff]  }
 0x1ad   :  { %1739 = vtanh.f32 %v800_v18  ;;  %v1732_v28 = vpop.eup %1731  ;;  %v761_v2 = vmul.f32 0.5, %v753_v44  ;;  %v762_v11 = vmul.f32 0.5, %v2042_v14 }
 0x1ae   :  { %1741 = vtanh.f32 %v801_v19  ;;  %v814_v30 = vadd.f32 1.0, %v1732_v28 }
 0x1af   :  { %1743 = vtanh.f32 %v802_v24 }
 0x1b0   :  { %1745 = vtanh.f32 %v803_v25  ;;  %v822_v16 = vmul.f32 %v814_v30, %v758_v41 }
 0x1b1   :  { %v1734_v29 = vpop.eup %1733 }
 0x1b2   :  { %v812_v39 = vadd.f32 1.0, %v1734_v29  ;;  %v1736_v40 = vpop.eup %1735  ;;  %v830_v7 = vmul.f32 %v822_v16, %v1879_v26 }
 0x1b3   :  { %v813_v49 = vadd.f32 1.0, %v1736_v40 }
 0x1b4   :  { %v820_v52 = vmul.f32 %v812_v39, %v756_v35 }
 0x1b5   :  { %v1738_v46 = vpop.eup %1737  ;;  %v821_v58 = vmul.f32 %v813_v49, %v757_v48 }
 0x1b6   :  { %v815_v54 = vadd.f32 1.0, %v1738_v46  ;;  %v828_v47 = vmul.f32 %v820_v52, %v1881_v27 }
 0x1b7   :  { %v1740_v55 = vpop.eup %1739  ;;  %v829_v37 = vmul.f32 %v821_v58, %v1897_v33  ;;  %v763_v33 = vmul.f32 0.5, %v2044_v38 }
 0x1b8   :  { %v1742_v62 = vpop.eup %1741  ;;  %v823_v63 = vmul.f32 %v815_v54, %v759_v6  ;;  %v816_v57 = vadd.f32 1.0, %v1740_v55 }
 0x1b9   :  { %v817_v53 = vadd.f32 1.0, %v1742_v62  ;;  %v1744_v3 = vpop.eup %1743  ;;  %v836_v9 = vpack.c.bf16 %v829_v37, %v828_v47 }
 0x1ba   :  { %v831_v4 = vmul.f32 %v823_v63, %v1895_v32  ;;  %v824_v36 = vmul.f32 %v816_v57, %v760_v0  ;;  %v1746_v5 = vpop.eup %1745  ;;  %v818_v27 = vadd.f32 1.0, %v1744_v3 }
 0x1bb   :  { %v825_v10 = vmul.f32 %v817_v53, %v761_v2  ;;  %v819_v44 = vadd.f32 1.0, %v1746_v5  ;;  %1618 = vmatprep.mubr.bf16.mxu1 %v836_v9  ;;  %1642 = vmatprep.mubr.bf16.mxu0 %v836_v9 }
 0x1bc   :  { %v837_v12 = vpack.c.bf16 %v831_v4, %v830_v7  ;;  %v832_v8 = vmul.f32 %v824_v36, %v1911_v43  ;;  %v826_v18 = vmul.f32 %v818_v27, %v762_v11 }
 0x1bd   :  { %v833_v26 = vmul.f32 %v825_v10, %v1909_v42  ;;  %v827_v32 = vmul.f32 %v819_v44, %v763_v33  ;;  %v1727_v42 = vld [vmem:[#allocation2 + $0x160] sm:$0xff]  }
 0x1be   :  { %1619 = vmatmul.mubr.bf16.vlgmr.msra.gmra.mrb[8].mxu1 %v837_v12  ;;  %1643 = vmatmul.mubr.bf16.vlgmr.msra.gmra.mrb[16].mxu0 %v837_v12  ;;  %v834_v14 = vmul.f32 %v826_v18, %v1923_v51  ;;  %v1729_v51 = vld [vmem:[#allocation2 + $0x170] sm:$0xff]  }
 0x1bf   :  { %1651 = vmatpush3.bf16.msra.mxu1 %v1927_v13  ;;  %v838_v19 = vpack.c.bf16 %v833_v26, %v832_v8  ;;  %v835_v43 = vmul.f32 %v827_v32, %v1921_v50  ;;  %v1728_v13 = vld [vmem:[#allocation2 + $0x168] sm:$0xff]   ;;  %v1730_v50 = vld [vmem:[#allocation2 + $0x178] sm:$0xff]  }
 0x1c0   :  { %1652 = vmatprep.subr.bf16.mxu1 %v1724_v17 }
 0x1c1   :  { %1622 = vmatprep.mubr.bf16.mxu1 %v838_v19  ;;  %1646 = vmatprep.mubr.bf16.mxu0 %v838_v19  ;;  %v839_v38 = vpack.c.bf16 %v835_v43, %v834_v14 }
 0x1c3   :  { %1653 = vmatpush3.bf16.msra.mxu1 %v1724_v17 }
 0x1c4   :  { %1654 = vmatprep.subr.bf16.mxu1 %v1725_v20 }
 0x1c6   :  { %1623 = vmatmul.mubr.bf16.gmra.mrb[12].mxu1 %v839_v38  ;;  %1647 = vmatmul.mubr.bf16.gmra.mrb[20].mxu0 %v839_v38 }
 0x1c7   :  { %1655 = vmatpush3.bf16.msra.mxu1 %v1725_v20  ;;  %1666 = vmatprep.mubr.bf16.mxu1 %v836_v9 }
 0x1c8   :  { %1656 = vmatprep.subr.bf16.mxu1 %v1726_v22 }
 0x1cb   :  { %1657 = vmatpush3.bf16.msra.mxu1 %v1726_v22 }
 0x1cc   :  { %1658 = vmatprep.subr.bf16.mxu1 %v1727_v42 }
 0x1cf   :  { %1659 = vmatpush3.bf16.msra.mxu1 %v1727_v42 }
 0x1d0   :  { %1660 = vmatprep.subr.bf16.mxu1 %v1728_v13 }
 0x1d3   :  { %1661 = vmatpush3.bf16.msra.mxu1 %v1728_v13 }
 0x1d4   :  { %1662 = vmatprep.subr.bf16.mxu1 %v1729_v51 }
 0x1d7   :  { %1663 = vmatpush3.bf16.msra.mxu1 %v1729_v51 }
 0x1d8   :  { %1664 = vmatprep.subr.bf16.mxu1 %v1730_v50 }
 0x1db   :  { %1665 = vmatpush3.bf16.msra.mxu1 %v1730_v50 }
 0x1de   :  { %1667 = vmatmul.mubr.bf16.vlgmr.msra.gmra.mrb[16].mxu1 %v837_v12 }
 0x1df   :  { %1670 = vmatprep.mubr.bf16.mxu1 %v838_v19 }
 0x1e6   :  { %1671 = vmatmul.mubr.bf16.gmra.mrb[20].mxu1 %v839_v38 }
 0x291   :  { %v1620_v23 = vpop.f32.mrb[8].mxu1  ;;  %v1644_v21 = vpop.f32.mrb[16].mxu0 }
 0x292   :  { %v939_v24 = vpop.f32.mrb[9].mxu1  ;;  %v1093_v25 = vpop.f32.mrb[17].mxu0  ;;  %v972_v30 = vrot.slane %v1620_v23, 7 }
 0x293   :  { %v1621_v28 = vpop.f32.mrb[10].mxu1  ;;  %v1645_v29 = vpop.f32.mrb[18].mxu0  ;;  %v970_v41 = vrot.slane %v939_v24, 7 }
 0x294   :  { %v973_v35 = vrot.slane %v1621_v28, 7  ;;  %v942_v39 = vpop.f32.mrb[11].mxu1  ;;  %v1096_v40 = vpop.f32.mrb[19].mxu0 }
 0x295   :  { %v971_v46 = vrot.slane %v942_v39, 7 }
 0x296   :  { %v982_v48 = vsel %vm391_vm0, %v972_v30, %v973_v35 }
 0x297   :  { %v2072_v49 = vadd.f32 %v1645_v29, %v982_v48  ;;  %v983_v52 = vsel %vm391_vm0, %v971_v46, %v972_v30  ;;  %v984_v6 = vsel %vm391_vm0, %v970_v41, %v971_v46 }
 0x298   :  { %v988_v54 = vsel %vm1935_vm1, %v983_v52, 0.0  ;;  %v1125_v16 = vadd.f32 %v1096_v40, %v984_v6 }
 0x299   :  { %v1126_v55 = vadd.f32 %v1644_v21, %v988_v54  ;;  %v1624_v58 = vpop.f32.mrb[12].mxu1  ;;  %v1648_v47 = vpop.f32.mrb[20].mxu0 }
 0x29a   :  { %v955_v62 = vpop.f32.mrb[13].mxu1  ;;  %v1109_v63 = vpop.f32.mrb[21].mxu0  ;;  %v976_v2 = vrot.slane %v1624_v58, 7 }
 0x29b   :  { %v974_v0 = vrot.slane %v955_v62, 7  ;;  %v1625_v57 = vpop.f32.mrb[14].mxu1  ;;  %v1649_v37 = vpop.f32.mrb[22].mxu0 }
 0x29c   :  { %v977_v53 = vrot.slane %v1625_v57, 7  ;;  %v958_v3 = vpop.f32.mrb[15].mxu1  ;;  %v1112_v7 = vpop.f32.mrb[23].mxu0 }
 0x29d   :  { %v981_v4 = vsel %vm391_vm0, %v973_v35, %v974_v0  ;;  %v975_v36 = vrot.slane %v958_v3, 7 }
 0x29e   :  { %v990_v34 = vsel %vm1951_vm2, %v981_v4, 0.0  ;;  %v985_v5 = vsel %vm391_vm0, %v977_v53, %v970_v41  ;;  %v978_v9 = vsel %vm391_vm0, %v976_v2, %v977_v53 }
 0x29f   :  { %v2088_v10 = vadd.f32 %v1109_v63, %v990_v34  ;;  %v986_v11 = vsel %vm1955_vm3, %v985_v5, 0.0  ;;  %v1131_v27 = vadd.f32 %v1649_v37, %v978_v9  ;;  %v979_v12 = vsel %vm391_vm0, %v975_v36, %v976_v2 }
 0x2a0   :  { %v1124_v8 = vadd.f32 %v1093_v25, %v986_v11  ;;  %v992_v56 = vsel %vm1961_vm4, %v979_v12, 0.0  ;;  %v980_v17 = vsel %vm391_vm0, %v974_v0, %v975_v36 }
 0x2a1   :  { %v1130_v33 = vadd.f32 %v1648_v47, %v992_v56  ;;  %v2098_v44 = vadd.f32 %v1112_v7, %v980_v17 }
 0x2b1   :  { %v1668_v26 = vpop.f32.mrb[16].mxu1 }
 0x2b2   :  { %v1231_v18 = vpop.f32.mrb[17].mxu1  ;;  %v1264_v19 = vrot.slane %v1668_v26, 1 }
 0x2b3   :  { %v1669_v32 = vpop.f32.mrb[18].mxu1  ;;  %v1262_v20 = vrot.slane %v1231_v18, 1 }
 0x2b4   :  { %v1265_v60 = vrot.slane %v1669_v32, 1  ;;  %v1234_v14 = vpop.f32.mrb[19].mxu1 }
 0x2b5   :  { %v1263_v43 = vrot.slane %v1234_v14, 1 }
 0x2b6   :  { %v1274_v38 = vsel %vm700_vm5, %v1264_v19, %v1265_v60 }
 0x2b7   :  { %v1288_v22 = vadd.f32 %v1274_v38, %v1126_v55  ;;  %v1275_v42 = vsel %vm700_vm5, %v1263_v43, %v1264_v19  ;;  %v1276_v13 = vsel %vm700_vm5, %v1262_v20, %v1263_v43 }
 0x2b8   :  { %v1279_v51 = vsel %vm1986_vm6, %v1275_v42, 0.0  ;;  %v1286_v50 = vadd.f32 %v1276_v13, %v1124_v8 }
 0x2b9   :  { %v2111_v23 = vadd.f32 %v1457_v1, %v1288_v22  ;;  %v1287_v21 = vadd.f32 %v1279_v51, %v1125_v16  ;;  %v1672_v24 = vpop.f32.mrb[20].mxu1 }
 0x2ba   :  { %v2113_v25 = vadd.f32 %v1457_v1, %v1286_v50  ;;  %v1247_v28 = vpop.f32.mrb[21].mxu1  ;;  %v1268_v52 = vrot.slane %v1672_v24, 1 }
 0x2bb   :  { %v1328_v29 = vmul.f32 0.044715, %v2111_v23  ;;  %v2116_v30 = vadd.f32 %v1457_v1, %v1287_v21  ;;  %v1673_v35 = vpop.f32.mrb[22].mxu1  ;;  %v1320_v39 = vmul.f32 0.7978846, %v2111_v23  ;;  %v1266_v41 = vrot.slane %v1247_v28, 1 }
 0x2bc   :  { %v1326_v40 = vmul.f32 0.044715, %v2113_v25  ;;  %v1318_v46 = vmul.f32 0.7978846, %v2113_v25  ;;  %v1250_v6 = vpop.f32.mrb[23].mxu1  ;;  %v1269_v55 = vrot.slane %v1673_v35, 1 }
 0x2bd   :  { %v1336_v31 = vmul.f32 %v1328_v29, %v2111_v23  ;;  %v1327_v48 = vmul.f32 0.044715, %v2116_v30  ;;  %v1273_v16 = vsel %vm700_vm5, %v1265_v60, %v1266_v41  ;;  %v1267_v58 = vrot.slane %v1250_v6, 1 }
 0x2be   :  { %v1334_v54 = vmul.f32 %v1326_v40, %v2113_v25  ;;  %v1319_v62 = vmul.f32 0.7978846, %v2116_v30  ;;  %v1281_v0 = vsel %vm2006_vm7, %v1273_v16, 0.0  ;;  %v1270_v2 = vsel %vm700_vm5, %v1268_v52, %v1269_v55 }
 0x2bf   :  { %v1344_v47 = vadd.f32 1.0, %v1336_v31  ;;  %v1335_v63 = vmul.f32 %v1327_v48, %v2116_v30  ;;  %v1289_v37 = vadd.f32 %v1281_v0, %v2072_v49  ;;  %v1277_v53 = vsel %vm700_vm5, %v1269_v55, %v1262_v20 }
 0x2c0   :  { %v1342_v57 = vadd.f32 1.0, %v1334_v54  ;;  %v1285_v4 = vsel %vm2010_vm8, %v1277_v53, 0.0  ;;  %v1292_v36 = vadd.f32 %v1270_v2, %v1130_v33  ;;  %v1271_v59 = vsel %vm700_vm5, %v1267_v58, %v1268_v52 }
 0x2c1   :  { %v1352_v3 = vmul.f32 %v1344_v47, %v1320_v39  ;;  %v1343_v7 = vadd.f32 1.0, %v1335_v63  ;;  %v1305_v5 = vadd.f32 %v1457_v1, %v1289_v37  ;;  %v1293_v9 = vadd.f32 %v1285_v4, %v1131_v27 }
 0x2c2   :  { %v1350_v34 = vmul.f32 %v1342_v57, %v1318_v46  ;;  %v1308_v11 = vadd.f32 %v1457_v1, %v1292_v36  ;;  %v1272_v12 = vsel %vm700_vm5, %v1266_v41, %v1267_v58  ;;  %v1283_v33 = vsel %vm2014_vm9, %v1271_v59, 0.0 }
 0x2c3   :  { %1747 = vtanh.f32 %v1352_v3  ;;  %v1351_v49 = vmul.f32 %v1343_v7, %v1319_v62  ;;  %v1329_v8 = vmul.f32 0.044715, %v1305_v5  ;;  %v1309_v56 = vadd.f32 %v1457_v1, %v1293_v9 }
 0x2c4   :  { %1749 = vtanh.f32 %v1350_v34  ;;  %v1332_v61 = vmul.f32 0.044715, %v1308_v11  ;;  %v1290_v27 = vadd.f32 %v1272_v12, %v2088_v10  ;;  %v1291_v18 = vadd.f32 %v1283_v33, %v2098_v44 }
 0x2c5   :  { %1751 = vtanh.f32 %v1351_v49  ;;  %v1337_v17 = vmul.f32 %v1329_v8, %v1305_v5  ;;  %v1333_v26 = vmul.f32 0.044715, %v1309_v56  ;;  %v1321_v32 = vmul.f32 0.7978846, %v1305_v5 }
 0x2c6   :  { %v1340_v60 = vmul.f32 %v1332_v61, %v1308_v11  ;;  %v1306_v14 = vadd.f32 %v1457_v1, %v1290_v27  ;;  %v1307_v20 = vadd.f32 %v1457_v1, %v1291_v18  ;;  %v1324_v38 = vmul.f32 0.7978846, %v1308_v11 }
 0x2c7   :  { %v1345_v19 = vadd.f32 1.0, %v1337_v17  ;;  %v1341_v15 = vmul.f32 %v1333_v26, %v1309_v56  ;;  %v1325_v42 = vmul.f32 0.7978846, %v1309_v56  ;;  %v1312_v10 = vmul.f32 0.5, %v2111_v23 }
 0x2c8   :  { %v1348_v22 = vadd.f32 1.0, %v1340_v60  ;;  %v1330_v51 = vmul.f32 0.044715, %v1306_v14  ;;  %v1331_v50 = vmul.f32 0.044715, %v1307_v20  ;;  %v1310_v44 = vmul.f32 0.5, %v2113_v25 }
 0x2c9   :  { %v1353_v43 = vmul.f32 %v1345_v19, %v1321_v32  ;;  %v1349_v13 = vadd.f32 1.0, %v1341_v15  ;;  %v1311_v1 = vmul.f32 0.5, %v2116_v30  ;;  %v1322_v31 = vmul.f32 0.7978846, %v1306_v14 }
 0x2ca   :  { %v1356_v45 = vmul.f32 %v1348_v22, %v1324_v38  ;;  %v1338_v28 = vmul.f32 %v1330_v51, %v1306_v14  ;;  %v1339_v39 = vmul.f32 %v1331_v50, %v1307_v20  ;;  %v1323_v6 = vmul.f32 0.7978846, %v1307_v20 }
 0x2cb   :  { %1753 = vtanh.f32 %v1353_v43  ;;  %v1357_v24 = vmul.f32 %v1349_v13, %v1325_v42  ;;  %v1313_v58 = vmul.f32 0.5, %v1305_v5  ;;  %v1316_v57 = vmul.f32 0.5, %v1308_v11 }
 0x2cc   :  { %1755 = vtanh.f32 %v1356_v45  ;;  %v1346_v46 = vadd.f32 1.0, %v1338_v28  ;;  %v1347_v54 = vadd.f32 1.0, %v1339_v39  ;;  %v1317_v2 = vmul.f32 0.5, %v1309_v56 }
 0x2cd   :  { %v1748_v21 = vpop.eup %1747  ;;  %1757 = vtanh.f32 %v1357_v24  ;;  %v1314_v34 = vmul.f32 0.5, %v1306_v14  ;;  %v1315_v5 = vmul.f32 0.5, %v1307_v20 }
 0x2ce   :  { %v1750_v29 = vpop.eup %1749  ;;  %v1368_v35 = vadd.f32 1.0, %v1748_v21  ;;  %v1354_v16 = vmul.f32 %v1346_v46, %v1322_v31  ;;  %v1355_v55 = vmul.f32 %v1347_v54, %v1323_v6 }
 0x2cf   :  { %v1752_v40 = vpop.eup %1751  ;;  %v1366_v41 = vadd.f32 1.0, %v1750_v29 }
 0x2d0   :  { %v1376_v48 = vmul.f32 %v1368_v35, %v1312_v10  ;;  %v1367_v52 = vadd.f32 1.0, %v1752_v40  ;;  %1759 = vtanh.f32 %v1354_v16 }
 0x2d1   :  { %v1374_v23 = vmul.f32 %v1366_v41, %v1310_v44  ;;  %1761 = vtanh.f32 %v1355_v55 }
 0x2d2   :  { %1384 = vst [vmem:[#allocation5 + $0x10] sm:$0xff] %v1376_v48  ;;  %v1375_v25 = vmul.f32 %v1367_v52, %v1311_v1 }
 0x2d3   :  { %1382 = vst [vmem:[#allocation5] sm:$0xff] %v1374_v23 }
 0x2d4   :  { %1383 = vst [vmem:[#allocation5 + $0x8] sm:$0xff] %v1375_v25 }
 0x2d5   :  { %v1754_v30 = vpop.eup %1753 }
 0x2d6   :  { %v1369_v47 = vadd.f32 1.0, %v1754_v30  ;;  %v1756_v62 = vpop.eup %1755 }
 0x2d7   :  { %v1758_v63 = vpop.eup %1757  ;;  %v1372_v37 = vadd.f32 1.0, %v1756_v62 }
 0x2d8   :  { %v1377_v0 = vmul.f32 %v1369_v47, %v1313_v58  ;;  %v1373_v53 = vadd.f32 1.0, %v1758_v63 }
 0x2d9   :  { %v1380_v3 = vmul.f32 %v1372_v37, %v1316_v57 }
 0x2da   :  { %1385 = vst [vmem:[#allocation5 + $0x18] sm:$0xff] %v1377_v0  ;;  %v1381_v7 = vmul.f32 %v1373_v53, %v1317_v2  ;;  %v1760_v4 = vpop.eup %1759 }
 0x2db   :  { %1388 = vst [vmem:[#allocation5 + $0x30] sm:$0xff] %v1380_v3  ;;  %v1762_v36 = vpop.eup %1761  ;;  %v1370_v9 = vadd.f32 1.0, %v1760_v4 }
 0x2dc   :  { %1389 = vst [vmem:[#allocation5 + $0x38] sm:$0xff] %v1381_v7  ;;  %v1371_v59 = vadd.f32 1.0, %v1762_v36 }
 0x2dd   :  { %v1378_v49 = vmul.f32 %v1370_v9, %v1314_v34 }
 0x2de   :  { %v1379_v12 = vmul.f32 %v1371_v59, %v1315_v5 }
 0x2df   :  { %1386 = vst [vmem:[#allocation5 + $0x20] sm:$0xff] %v1378_v49 }
 0x2e0   :  { %1387 = vst [vmem:[#allocation5 + $0x28] sm:$0xff] %v1379_v12 }
 0x2e1   :  { %1796 = shalt.err (!%p1793_p12)
}
 0x2e2   :  { %s1797_s13 = scalar_lea.hbm %s2164_s4, 1024 }
 0x2e3   :  { %p1798_p13 = scmp.ne.s32.totalorder %s2164_s4, %s1797_s13  ;;  %p1801_p0 = scmp.lt.u32.totalorder %s1797_s13, %s2164_s4 }
 0x2e5   :  { %p1803_p1 = pnand %p1801_p0, %p1798_p13 }
 0x2e7   :  { %1806 = shalt.err (!%p1803_p1)
}
 0x2e8   :  { %s1816_s1 = smov 128   ;;  %s1817_s18 = smov 8  }
 0x2e9   :  { %1401 = dma.vmem_to_hbm [thread:$0]  %s1396_s9, 1024, %s2164_s4, [#allocation4], %s1816_s1, %s1816_s1, %s1817_s18  }
 0x2ea   :  { %1809 = dma.done.wait [#allocation4], 1024  }
 0x2eb   :  { %1810 = vsyncadd [#allocation4], 4294966272 }
 0x2ec   :  { %1405 = vsyncpa [#allocation3], 1 }
 0x2ed   :  { %1406 = vsyncpa [#allocation4], 1 }

</bundles_post_ra>
